<compile_context>
chip_gen: v6e
topology: v6e:2x2x1
jax: 0.10.0
libtpu: 0.0.40
codegen_flags: <defaults>
</compile_context>

<pallas_src>
import functools

import jax
import jax.numpy as jnp
from jax.experimental import pallas as pl
from jax.experimental.pallas import tpu as pltpu


# ---------------------------------------------------------------------------
# Kernel body: elementwise add/sub with a (1, tl)-row broadcast over the batch.
# ---------------------------------------------------------------------------
def _make_kernel(sign):
    def kernel(emb_ref, pos_ref, out_ref):
        pos = pos_ref[...].astype(emb_ref.dtype)   # in-kernel cast: free VPU slack
        if sign >= 0:
            out_ref[...] = emb_ref[...] + pos
        else:
            out_ref[...] = emb_ref[...] - pos
    return kernel


# ---------------------------------------------------------------------------
# Per-chip VMEM budgets.
# ---------------------------------------------------------------------------
def _hw_budgets():
    try:
        cap = int(pltpu.get_tpu_info().vmem_capacity_bytes)
    except Exception:
        cap = 64 << 20  # conservative fallback: smallest per-TC VMEM (v7x)
    # Per-buffer tile budget: 8 MiB on v7x (64 MiB VMEM), 16 MiB on v5e/v6e (128 MiB).
    max_tile_bytes = min(16 << 20, max(1 << 20, cap // 8))
    # Actual footprint ~= 4 x tile (double-buffered in + out) + tiny pos row + slack.
    vmem_limit_bytes = min(cap, 4 * max_tile_bytes + (8 << 20))
    return max_tile_bytes, vmem_limit_bytes


# ---------------------------------------------------------------------------
# Tile selection: aligned tiles only; ragged last block handled by cdiv grid.
# ---------------------------------------------------------------------------
def _choose_tiles(rows, lanes, itemsize, max_tile_bytes):
    max_elems = max(1024, max_tile_bytes // itemsize)

    # Lane tile: full width when it fits (legal even if not a 128-multiple,
    # because block == full array dim); otherwise a 128-aligned tile.
    if lanes <= max_elems:
        tl = lanes
    else:
        tl = max(128, (max_elems // 128) * 128)

    # Row tile: fill remaining budget; multiple of the sublane packing unit
    # (8 for f32, 16 for bf16, 32 for int8) unless it is the full dim.
    row_unit = max(8, 32 // max(1, itemsize))
    max_rows = max(1, max_elems // tl)
    if rows <= max_rows:
        tr = rows
    else:
        tr = max(row_unit, (max_rows // row_unit) * row_unit)
        tr = min(tr, rows) if rows >= row_unit else rows

    return tr, tl, row_unit


# ---------------------------------------------------------------------------
# Shared jitted wrapper for forward (+pos) and reverse (-pos).
# Donating arg 0 makes the in-kernel output alias real (no defensive copy).
# ---------------------------------------------------------------------------
@functools.partial(jax.jit, static_argnames=("sign",), donate_argnums=(0,))
def _pos_encode(embeddings, pos_embed, *, sign):
    B, S, D = embeddings.shape
    assert pos_embed.ndim == 3 and pos_embed.shape[0] == 1 and pos_embed.shape[2] == D
    max_seq = pos_embed.shape[1]
    assert S <= max_seq

    R, L = B, S * D
    itemsize = jnp.dtype(embeddings.dtype).itemsize

    # Lane-dense flattening (contiguous reshape, no data movement).
    emb2d = embeddings.reshape(R, L)
    # Slice the used prefix of the positional parameter (tiny; dtype cast is in-kernel).
    pos2d = pos_embed[:, :S, :].reshape(1, L)

    max_tile_bytes, vmem_limit_bytes = _hw_budgets()
    tr, tl, row_unit = _choose_tiles(R, L, itemsize, max_tile_bytes)

    nL, nR = pl.cdiv(L, tl), pl.cdiv(R, tr)
    # Give v7x's two TensorCores something to shard when the grid would be a
    # single block (both axes are 'parallel').
    if nL * nR == 1:
        if L >= 256:
            tl = max(128, 128 * pl.cdiv(pl.cdiv(L, 2), 128))
            nL = pl.cdiv(L, tl)
        elif R >= 2 * row_unit:
            tr = max(row_unit, row_unit * pl.cdiv(pl.cdiv(R, 2), row_unit))
            nR = pl.cdiv(R, tr)

    # Lane-tile axis OUTER, row-tile axis INNER: pos block index (0, j) is
    # constant across the inner loop -> no repeated pos DMA.
    grid = (nL, nR)

    out2d = pl.pallas_call(
        _make_kernel(sign),
        out_shape=jax.ShapeDtypeStruct((R, L), embeddings.dtype),
        grid_spec=pltpu.PrefetchScalarGridSpec(
            num_scalar_prefetch=0,
            grid=grid,
            in_specs=[
                pl.BlockSpec((tr, tl), lambda j, i: (i, j)),  # embeddings tile
                pl.BlockSpec((1, tl), lambda j, i: (0, j)),   # shared positional row window
            ],
            out_specs=pl.BlockSpec((tr, tl), lambda j, i: (i, j)),
        ),
        compiler_params=pltpu.CompilerParams(
            dimension_semantics=("parallel", "parallel"),
            vmem_limit_bytes=vmem_limit_bytes,
        ),
        input_output_aliases={0: 0},  # reuse the (donated) embeddings buffer for the output
    )(emb2d, pos2d)

    return out2d.reshape(B, S, D)


def positional_encoding_forward(embeddings, pos_embed, class_idx=None):
    """embeddings: (B, S, D); pos_embed: (1, max_seq_length, D). Returns embeddings + pos.

    NOTE: `embeddings` is donated (its buffer is reused for the output).
    """
    # TODO(synk): cls-token / guidance path (use_cls_token) is a no-op in the reference forward.
    del class_idx
    return _pos_encode(embeddings, pos_embed, sign=+1)


def positional_encoding_reverse(embeddings, pos_embed):
    """Inverse of forward: embeddings - pos. `embeddings` is donated."""
    return _pos_encode(embeddings, pos_embed, sign=-1)


if __name__ == "__main__":
    # Config-implied small shapes: d_model = d_patch = 32, max_seq_length = 16.
    B, S, D = 2, 8, 32
    MAX_SEQ = 16

    key = jax.random.PRNGKey(0)
    k_emb, k_pos = jax.random.split(key)

    embeddings = jax.random.normal(k_emb, (B, S, D), dtype=jnp.float32)
    # mirrors torch.randn(1, max_seq_length, d_patch)
    pos_embed = jax.random.normal(k_pos, (1, MAX_SEQ, D), dtype=jnp.float32)

    # Plain-JAX reference (computed before donating any buffers).
    ref = embeddings + pos_embed[:, :S, :]

    # Pass copies into the kernel since the wrappers donate their first argument.
    out = jax.block_until_ready(positional_encoding_forward(jnp.copy(embeddings), pos_embed))
    assert jnp.allclose(out, ref, atol=1e-6), "forward mismatch vs reference"

    # Round-trip (approximate inverse in floating point).
    rt = jax.block_until_ready(positional_encoding_reverse(jnp.copy(out), pos_embed))
    assert jnp.allclose(rt, embeddings, atol=1e-5), "reverse mismatch"

    print("KERNEL_OK")
</pallas_src>

<mosaic_0001>
module attributes {stable_mosaic.version = 11 : i64} {
  func.func @kernel(%arg0: i32, %arg1: i32, %arg2: memref<2x128xf32, #tpu.memory_space<vmem>>, %arg3: memref<1x128xf32, #tpu.memory_space<vmem>>, %arg4: memref<2x128xf32, #tpu.memory_space<vmem>>) attributes {dimension_semantics = [#tpu.dimension_semantics<parallel>, #tpu.dimension_semantics<parallel>], iteration_bounds = array<i64: 2, 1>, scalar_prefetch = 0 : i64, scratch_operands = 0 : i64, tpu.core_type = #tpu.core_type<tc>, window_params = [{transform_indices = @transform_0, window_bounds = array<i64: 2, 128>}, {transform_indices = @transform_1, window_bounds = array<i64: 1, 128>}, {transform_indices = @transform_2, window_bounds = array<i64: 2, 128>}]} {
    %c0 = arith.constant 0 : index
    %c0_0 = arith.constant 0 : index
    %0 = vector.load %arg3[%c0, %c0_0] : memref<1x128xf32, #tpu.memory_space<vmem>>, vector<1x128xf32>
    %c0_1 = arith.constant 0 : index
    %c0_2 = arith.constant 0 : index
    %1 = vector.load %arg2[%c0_1, %c0_2] : memref<2x128xf32, #tpu.memory_space<vmem>>, vector<2x128xf32>
    %2 = vector.broadcast %0 : vector<1x128xf32> to vector<2x128xf32>
    %3 = arith.addf %1, %2 : vector<2x128xf32>
    %c0_3 = arith.constant 0 : index
    %c0_4 = arith.constant 0 : index
    %4 = vector.load %arg4[%c0_3, %c0_4] : memref<2x128xf32, #tpu.memory_space<vmem>>, vector<2x128xf32>
    tpu.vector_store %arg4[%c0_3, %c0_4], %3 {strides = array<i32>} : memref<2x128xf32, #tpu.memory_space<vmem>>, vector<2x128xf32>,
    return
  }
  func.func @transform_0(%arg0: i32, %arg1: i32) -> (i32, i32) {
    %c0_i32 = arith.constant 0 : i32
    return %arg1, %arg0 : i32, i32
  }
  func.func @transform_1(%arg0: i32, %arg1: i32) -> (i32, i32) {
    %c0_i32 = arith.constant 0 : i32
    %c0_i32_0 = arith.constant 0 : i32
    return %c0_i32, %arg0 : i32, i32
  }
  func.func @transform_2(%arg0: i32, %arg1: i32) -> (i32, i32) {
    %c0_i32 = arith.constant 0 : i32
    return %arg1, %arg0 : i32, i32
  }
}

</mosaic_0001>

<bundles_post_ra>
// kernel: _pos_encode.1
= control target key start
LH: loop header
LB: loop body
LE: loop exit
PB: predicated region body
PF: predicated region fallthrough
CT: control target
= control target key end

     0   :  { %s364_s9 = smov 0   ;;  %s366_s10 = smov 0   ;;  %s383_s0 = inlined_call_operand.vmem [shape: f32[2,256], index: 0, kind: input, shape index: {}, may-alias: {0,2}]   ;;  %s384_s1 = inlined_call_operand.vmem [shape: f32[1,256], index: 1, kind: input, shape index: {}]   ;;  %s385_s2 = inlined_call_operand.vmem [shape: f32[2,256], index: 2, kind: output, shape index: {}, may-alias: {0,2}]  }
   0x1   :  { %s345_s11 = smov 0  }
   0x2 LB: > { %s24_s12 = sadd.s32 1, %s343_s10  ;;  %p295_p0 = scmp.ge.s32.totalorder %s347_s11, 1  ;;  %s347_s11 = sphi %s345_s11, %s12_s11   ;;  %s343_s10 = sphi %s366_s10, %s387_s10   ;;  %s339_s9 = sphi %s364_s9, %s386_s9  }
   0x3   : > { %p26_p1 = scmp.ge.s32.totalorder %s24_s12, 2  ;;  %p139_p2 = scmp.lt.s32.totalorder %s347_s11, 3 }
   0x5   : > { %s389_s12 = smov (%p26_p1, %s24_s12), 0  ;;  %p140_p3 = pnand %p295_p0, %p139_p2 }
   0x6   : > { %p172_p4 = scmp.lt.s32.totalorder (!%p140_p3), %s339_s9, 1 }
   0x7   : > { %143 = sbr.rel (%p140_p3) target bundleno = 19 (0x13), region = 28 }
   0xc   : > { %s391_s9 = smov (!%p172_p4, %s339_s9), 1 }
   0xd   : > { %s296_s13 = sshll.u32 %s391_s9, 1  ;;  %s180_s16 = scalar_lea.vmem %s384_s1, %s391_s9 }
   0xe   : > { %s177_s19 = scalar_lea.vmem %s383_s0, %s296_s13  ;;  %v298_v0 = vld [vmem:[%s180_s16] ss:$0 sm:$0xff]  ;;  %s188_s22 = scalar_lea.vmem %s385_s2, %s296_s13 }
   0xf   : > { %v190_v1 = vld [vmem:[%s177_s19] sm:$0x3] }
  0x10   : > { %v197_v2 = vadd.f32 %v298_v0, %v190_v1 }
  0x12   : > { %198 = vst [vmem:[%s188_s22] sm:$0x3] %v197_v2 }
  0x13 PF: > { %s12_s11 = sadd.s32 1, %s347_s11   ;;  %s386_s9 = smov %s343_s10 }
  0x14   : > { %p9_p5 = scmp.ge.s32.totalorder %s12_s11, 4   ;;  %s387_s10 = smov %s389_s12 }
  0x16   :  { %11 = sbr.rel (!%p9_p5) target bundleno = 2 (0x2), region = 61 }

</bundles_post_ra>
